<compile_context>
chip_gen: v5e
topology: v5e:2x2
jax: 0.10.0
libtpu: 0.0.40
codegen_flags: <defaults>
</compile_context>

<pallas_src>
import jax
import jax.numpy as jnp
from jax.experimental import pallas as pl
from jax.experimental.pallas import tpu as pltpu

NDOFS = 7          # robot DoFs (e.g. Franka)
TWIST_DIM = 6      # EE twist dimension
WEIGHT = 1.0       # scalar cost weight


def _ee_acc_cost_kernel(w_ref, j_ref, qd_ref, out_ref):
    """One tile of Mt rows (rows on lanes).

    w_ref  : SMEM [K]            folded weights: weight * vec_weight**2 (fp32)
    j_ref  : VMEM [K, ndofs, Mt] Jacobian (lane-dense over rows)
    qd_ref : VMEM [ndofs, Mt]    joint velocities (lane-dense over rows)
    out_ref: VMEM [1, Mt]        cost (lane-dense)

    NOTE: the last grid block may be ragged (lanes beyond M hold undefined
    data).  Every op here is per-lane, so garbage lanes never reach valid
    lanes, and Pallas masks the out-of-range output writes.  Do not add
    cross-lane ops without re-introducing input padding.
    """
    num_k = j_ref.shape[0]
    mt = qd_ref.shape[-1]

    qd = qd_ref[...].astype(jnp.float32)                     # [ndofs, Mt]
    err = jnp.zeros((1, mt), dtype=jnp.float32)

    # Static unroll over the 6 twist components: VPU multiplies + one small
    # 7-sublane reduction per component (no per-row lane reduce).  Each
    # j_ref[k] slice is its own 8-sublane-aligned slab -> no relayout.
    for k in range(num_k):
        jk = j_ref[k].astype(jnp.float32)                    # [ndofs, Mt]
        xk = jnp.sum(jk * qd, axis=0, keepdims=True)         # [1, Mt]
        err = err + w_ref[k] * (xk * xk)

    out_ref[...] = err.astype(out_ref.dtype)


def ee_acc_cost(state_batch, jac_batch, vec_weight, *, weight=WEIGHT,
                ndofs=NDOFS, block_m=8192):
    """Pallas implementation of EEAccCost.forward.

    state_batch: [B, H, >=2*ndofs]  (pos | vel | acc along last axis)
    jac_batch:   [B, H, K, ndofs]
    vec_weight:  [K]
    returns cost [B, H] in state_batch.dtype

    Note: mirrors the PyTorch module exactly — it uses the *velocity* slice
    state_batch[:, :, ndofs:2*ndofs] (qdot), as the original forward does.
    """
    B, H, _ = state_batch.shape
    K = jac_batch.shape[2]
    M = B * H

    vec_weight = jnp.asarray(vec_weight)
    if vec_weight.shape[0] != K:
        raise ValueError(
            f"vec_weight has {vec_weight.shape[0]} entries but jac_batch has "
            f"K={K} twist components")

    # ---- wrapper-side layout: put M = B*H on the lane axis -----------------
    qdot = state_batch[:, :, ndofs:2 * ndofs].reshape(M, ndofs)      # velocity slice
    qd_t = jnp.transpose(qdot, (1, 0))                               # [ndofs, M]
    j_t = jnp.transpose(jac_batch.reshape(M, K, ndofs), (1, 2, 0))   # [K, ndofs, M]

    # Fold scalar weight into the per-component weights once (fp32).
    w_eff = (jnp.asarray(weight, dtype=jnp.float32)
             * jnp.square(vec_weight.astype(jnp.float32)))           # [K]

    # ---- tile selection: lane tile multiple of 128, NO input padding -------
    m_ceil = pl.cdiv(M, 128) * 128
    tile = min(int(block_m), int(m_ceil))
    # If everything fits one tile but there is enough work, split into two so
    # the "parallel" grid axis can be sharded across v7x's 2 TensorCores.
    if tile == m_ceil and m_ceil >= 2048:
        tile = pl.cdiv(pl.cdiv(m_ceil, 2), 128) * 128
    grid = (pl.cdiv(M, tile),)

    in_bytes = (j_t.size * j_t.dtype.itemsize
                + qd_t.size * qd_t.dtype.itemsize)
    out_bytes = M * jnp.dtype(state_batch.dtype).itemsize
    cost_est = pl.CostEstimate(
        flops=int(M) * int(K) * (2 * ndofs + 3),
        transcendentals=0,
        bytes_accessed=int(in_bytes + out_bytes))

    out = pl.pallas_call(
        _ee_acc_cost_kernel,
        out_shape=jax.ShapeDtypeStruct((1, M), state_batch.dtype),
        grid_spec=pltpu.PrefetchScalarGridSpec(
            num_scalar_prefetch=1,            # w_eff -> SMEM
            grid=grid,
            in_specs=[
                pl.BlockSpec((K, ndofs, tile), lambda i, w: (0, 0, i)),  # J tile
                pl.BlockSpec((ndofs, tile), lambda i, w: (0, i)),        # qdot tile
            ],
            out_specs=pl.BlockSpec((1, tile), lambda i, w: (0, i)),      # lane-dense out
        ),
        compiler_params=pltpu.CompilerParams(
            dimension_semantics=("parallel",),
            vmem_limit_bytes=32 * 1024 * 1024),
        cost_estimate=cost_est,
    )(w_eff, j_t, qd_t)

    return out[0, :].reshape(B, H)


def ee_acc_cost_ref(state_batch, jac_batch, vec_weight, *, weight=WEIGHT, ndofs=NDOFS):
    """Pure-JAX reference (mirrors the PyTorch forward)."""
    qdot = state_batch[:, :, ndofs:2 * ndofs]
    xdot = jnp.einsum("bhkn,bhn->bhk", jac_batch, qdot)
    err = jnp.sum(jnp.square(vec_weight * xdot), axis=-1)
    return weight * err


if __name__ == "__main__":
    key = jax.random.PRNGKey(0)
    k_state, k_jac = jax.random.split(key)

    # Small shapes consistent with the module (B trajectories, H horizon).
    B, H = 2, 8
    state_dim = 3 * NDOFS  # pos, vel, acc

    state_batch = jax.random.normal(k_state, (B, H, state_dim), dtype=jnp.float32)
    jac_batch = jax.random.normal(k_jac, (B, H, TWIST_DIM, NDOFS), dtype=jnp.float32)
    vec_weight = jnp.array([1.0, 1.0, 1.0, 0.5, 0.5, 0.5], dtype=jnp.float32)

    cost = jax.block_until_ready(
        ee_acc_cost(state_batch, jac_batch, vec_weight, weight=WEIGHT))
    ref = ee_acc_cost_ref(state_batch, jac_batch, vec_weight, weight=WEIGHT)
    assert cost.shape == (B, H)
    assert jnp.allclose(cost, ref, rtol=1e-5, atol=1e-5), (cost, ref)

    # Second check: multi-step grid with a ragged (masked) last block.
    B2, H2 = 3, 333  # M = 999, block_m=256 -> grid of 4 with ragged tail
    state2 = jax.random.normal(k_state, (B2, H2, state_dim), dtype=jnp.float32)
    jac2 = jax.random.normal(k_jac, (B2, H2, TWIST_DIM, NDOFS), dtype=jnp.float32)
    cost2 = jax.block_until_ready(
        ee_acc_cost(state2, jac2, vec_weight, weight=WEIGHT, block_m=256))
    ref2 = ee_acc_cost_ref(state2, jac2, vec_weight, weight=WEIGHT)
    assert cost2.shape == (B2, H2)
    assert jnp.allclose(cost2, ref2, rtol=1e-5, atol=1e-5), (cost2, ref2)

    print("KERNEL_OK")
</pallas_src>

<mosaic_0001>
module attributes {stable_mosaic.version = 11 : i64} {
  func.func @_ee_acc_cost_kernel(%arg0: i32, %arg1: memref<6xf32, #tpu.memory_space<smem>>, %arg2: memref<6x7x128xf32, #tpu.memory_space<vmem>>, %arg3: memref<7x128xf32, #tpu.memory_space<vmem>>, %arg4: memref<1x128xf32, #tpu.memory_space<vmem>>) attributes {dimension_semantics = [#tpu.dimension_semantics<parallel>], iteration_bounds = array<i64: 1>, scalar_prefetch = 1 : i64, scratch_operands = 0 : i64, tpu.core_type = #tpu.core_type<tc>, window_params = [{transform_indices = @transform_0, window_bounds = array<i64: 6, 7, 128>}, {transform_indices = @transform_1, window_bounds = array<i64: 7, 128>}, {transform_indices = @transform_2, window_bounds = array<i64: 1, 128>}]} {
    %c0 = arith.constant 0 : index
    %c0_0 = arith.constant 0 : index
    %0 = vector.load %arg3[%c0, %c0_0] : memref<7x128xf32, #tpu.memory_space<vmem>>, vector<7x128xf32>
    %cst = arith.constant 0.000000e+00 : f32
    %1 = vector.broadcast %cst : f32 to vector<1x128xf32>
    %c0_1 = arith.constant 0 : index
    %c0_2 = arith.constant 0 : index
    %c0_3 = arith.constant 0 : index
    %2 = vector.load %arg2[%c0_1, %c0_2, %c0_3] : memref<6x7x128xf32, #tpu.memory_space<vmem>>, vector<1x7x128xf32>
    %3 = vector.shape_cast %2 : vector<1x7x128xf32> to vector<7x128xf32>
    %4 = arith.mulf %3, %0 : vector<7x128xf32>
    %cst_4 = arith.constant dense<0.000000e+00> : vector<128xf32>
    %5 = vector.multi_reduction <add>, %4, %cst_4 [0] : vector<7x128xf32> to vector<128xf32>
    %6 = vector.shape_cast %5 : vector<128xf32> to vector<1x128xf32>
    %c0_5 = arith.constant 0 : index
    %7 = memref.load %arg1[%c0_5] : memref<6xf32, #tpu.memory_space<smem>>
    %8 = arith.mulf %6, %6 : vector<1x128xf32>
    %9 = vector.broadcast %7 : f32 to vector<1x128xf32>
    %10 = arith.mulf %9, %8 : vector<1x128xf32>
    %11 = arith.addf %1, %10 : vector<1x128xf32>
    %c1 = arith.constant 1 : index
    %c0_6 = arith.constant 0 : index
    %c0_7 = arith.constant 0 : index
    %12 = vector.load %arg2[%c1, %c0_6, %c0_7] : memref<6x7x128xf32, #tpu.memory_space<vmem>>, vector<1x7x128xf32>
    %13 = vector.shape_cast %12 : vector<1x7x128xf32> to vector<7x128xf32>
    %14 = arith.mulf %13, %0 : vector<7x128xf32>
    %cst_8 = arith.constant dense<0.000000e+00> : vector<128xf32>
    %15 = vector.multi_reduction <add>, %14, %cst_8 [0] : vector<7x128xf32> to vector<128xf32>
    %16 = vector.shape_cast %15 : vector<128xf32> to vector<1x128xf32>
    %c1_9 = arith.constant 1 : index
    %17 = memref.load %arg1[%c1_9] : memref<6xf32, #tpu.memory_space<smem>>
    %18 = arith.mulf %16, %16 : vector<1x128xf32>
    %19 = vector.broadcast %17 : f32 to vector<1x128xf32>
    %20 = arith.mulf %19, %18 : vector<1x128xf32>
    %21 = arith.addf %11, %20 : vector<1x128xf32>
    %c2 = arith.constant 2 : index
    %c0_10 = arith.constant 0 : index
    %c0_11 = arith.constant 0 : index
    %22 = vector.load %arg2[%c2, %c0_10, %c0_11] : memref<6x7x128xf32, #tpu.memory_space<vmem>>, vector<1x7x128xf32>
    %23 = vector.shape_cast %22 : vector<1x7x128xf32> to vector<7x128xf32>
    %24 = arith.mulf %23, %0 : vector<7x128xf32>
    %cst_12 = arith.constant dense<0.000000e+00> : vector<128xf32>
    %25 = vector.multi_reduction <add>, %24, %cst_12 [0] : vector<7x128xf32> to vector<128xf32>
    %26 = vector.shape_cast %25 : vector<128xf32> to vector<1x128xf32>
    %c2_13 = arith.constant 2 : index
    %27 = memref.load %arg1[%c2_13] : memref<6xf32, #tpu.memory_space<smem>>
    %28 = arith.mulf %26, %26 : vector<1x128xf32>
    %29 = vector.broadcast %27 : f32 to vector<1x128xf32>
    %30 = arith.mulf %29, %28 : vector<1x128xf32>
    %31 = arith.addf %21, %30 : vector<1x128xf32>
    %c3 = arith.constant 3 : index
    %c0_14 = arith.constant 0 : index
    %c0_15 = arith.constant 0 : index
    %32 = vector.load %arg2[%c3, %c0_14, %c0_15] : memref<6x7x128xf32, #tpu.memory_space<vmem>>, vector<1x7x128xf32>
    %33 = vector.shape_cast %32 : vector<1x7x128xf32> to vector<7x128xf32>
    %34 = arith.mulf %33, %0 : vector<7x128xf32>
    %cst_16 = arith.constant dense<0.000000e+00> : vector<128xf32>
    %35 = vector.multi_reduction <add>, %34, %cst_16 [0] : vector<7x128xf32> to vector<128xf32>
    %36 = vector.shape_cast %35 : vector<128xf32> to vector<1x128xf32>
    %c3_17 = arith.constant 3 : index
    %37 = memref.load %arg1[%c3_17] : memref<6xf32, #tpu.memory_space<smem>>
    %38 = arith.mulf %36, %36 : vector<1x128xf32>
    %39 = vector.broadcast %37 : f32 to vector<1x128xf32>
    %40 = arith.mulf %39, %38 : vector<1x128xf32>
    %41 = arith.addf %31, %40 : vector<1x128xf32>
    %c4 = arith.constant 4 : index
    %c0_18 = arith.constant 0 : index
    %c0_19 = arith.constant 0 : index
    %42 = vector.load %arg2[%c4, %c0_18, %c0_19] : memref<6x7x128xf32, #tpu.memory_space<vmem>>, vector<1x7x128xf32>
    %43 = vector.shape_cast %42 : vector<1x7x128xf32> to vector<7x128xf32>
    %44 = arith.mulf %43, %0 : vector<7x128xf32>
    %cst_20 = arith.constant dense<0.000000e+00> : vector<128xf32>
    %45 = vector.multi_reduction <add>, %44, %cst_20 [0] : vector<7x128xf32> to vector<128xf32>
    %46 = vector.shape_cast %45 : vector<128xf32> to vector<1x128xf32>
    %c4_21 = arith.constant 4 : index
    %47 = memref.load %arg1[%c4_21] : memref<6xf32, #tpu.memory_space<smem>>
    %48 = arith.mulf %46, %46 : vector<1x128xf32>
    %49 = vector.broadcast %47 : f32 to vector<1x128xf32>
    %50 = arith.mulf %49, %48 : vector<1x128xf32>
    %51 = arith.addf %41, %50 : vector<1x128xf32>
    %c5 = arith.constant 5 : index
    %c0_22 = arith.constant 0 : index
    %c0_23 = arith.constant 0 : index
    %52 = vector.load %arg2[%c5, %c0_22, %c0_23] : memref<6x7x128xf32, #tpu.memory_space<vmem>>, vector<1x7x128xf32>
    %53 = vector.shape_cast %52 : vector<1x7x128xf32> to vector<7x128xf32>
    %54 = arith.mulf %53, %0 : vector<7x128xf32>
    %cst_24 = arith.constant dense<0.000000e+00> : vector<128xf32>
    %55 = vector.multi_reduction <add>, %54, %cst_24 [0] : vector<7x128xf32> to vector<128xf32>
    %56 = vector.shape_cast %55 : vector<128xf32> to vector<1x128xf32>
    %c5_25 = arith.constant 5 : index
    %57 = memref.load %arg1[%c5_25] : memref<6xf32, #tpu.memory_space<smem>>
    %58 = arith.mulf %56, %56 : vector<1x128xf32>
    %59 = vector.broadcast %57 : f32 to vector<1x128xf32>
    %60 = arith.mulf %59, %58 : vector<1x128xf32>
    %61 = arith.addf %51, %60 : vector<1x128xf32>
    %c0_26 = arith.constant 0 : index
    %c0_27 = arith.constant 0 : index
    %62 = vector.load %arg4[%c0_26, %c0_27] : memref<1x128xf32, #tpu.memory_space<vmem>>, vector<1x128xf32>
    tpu.vector_store %arg4[%c0_26, %c0_27], %61 {strides = array<i32>} : memref<1x128xf32, #tpu.memory_space<vmem>>, vector<1x128xf32>,
    return
  }
  func.func @transform_0(%arg0: i32, %arg1: memref<6xf32, #tpu.memory_space<smem>>) -> (i32, i32, i32) {
    %c0_i32 = arith.constant 0 : i32
    %c0_i32_0 = arith.constant 0 : i32
    %c0_i32_1 = arith.constant 0 : i32
    return %c0_i32, %c0_i32_0, %arg0 : i32, i32, i32
  }
  func.func @transform_1(%arg0: i32, %arg1: memref<6xf32, #tpu.memory_space<smem>>) -> (i32, i32) {
    %c0_i32 = arith.constant 0 : i32
    %c0_i32_0 = arith.constant 0 : i32
    return %c0_i32, %arg0 : i32, i32
  }
  func.func @transform_2(%arg0: i32, %arg1: memref<6xf32, #tpu.memory_space<smem>>) -> (i32, i32) {
    %c0_i32 = arith.constant 0 : i32
    %c0_i32_0 = arith.constant 0 : i32
    return %c0_i32, %arg0 : i32, i32
  }
}

</mosaic_0001>

<bundles_post_ra>
// kernel: tpu_custom_call.1
= control target key start
LH: loop header
LB: loop body
LE: loop exit
PB: predicated region body
PF: predicated region fallthrough
CT: control target
= control target key end

     0   :  { %s264_s15 = smov [#allocation3]   ;;  %s323_s0 = inlined_call_operand.hbm [shape: f32[6], index: 0, kind: input, shape index: {}]   ;;  %s324_s1 = inlined_call_operand.hbm [shape: f32[6,7,16], index: 1, kind: input, shape index: {}]   ;;  %s325_s2 = inlined_call_operand.hbm [shape: f32[7,16], index: 2, kind: input, shape index: {}]   ;;  %s326_s3 = inlined_call_operand.hbm [shape: f32[1,16], index: 3, kind: output, shape index: {}]  }
   0x1   :  { %s9_s14 = sshll.u32 %s323_s0, 4  ;;  %s10_s14 = int_to_ptr.hbm [resolvable:$true] %s9_s14 }
   0x2   :  { %12 = dma.hbm_to_smem %s10_s14, 16, %s264_s15, [#allocation2] }
   0x3   :  { %256 = dma.done.wait [#allocation2], 16 }
   0x4   :  { %257 = vsyncadd [#allocation2], 4294967280 }
   0x5   :  { %15 = sfence }
   0x6   :  { %16 = vsyncpa [#allocation5], 0 }
   0x7   :  { %17 = vsyncpa [#allocation8], 0 }
   0x8   :  { %18 = vsyncpa [#allocation6], 0  ;;  %s23_s18 = sshll.u32 %s324_s1, 4  ;;  %s265_s19 = smov [#allocation4]   ;;  %s24_s18 = int_to_ptr.hbm [resolvable:$true] %s23_s18 }
   0x9   :  { %s25_s20 = sshll.u32 %s265_s19, 4  ;;  %s37_s0 = sshll.u32 %s325_s2, 4  ;;  %s26_s20 = int_to_ptr.vmem [resolvable:$true] %s25_s20  ;;  %s38_s0 = int_to_ptr.hbm [resolvable:$true] %s37_s0 }
   0xa   :  { %s266_s23 = smov 128   ;;  %s267_s24 = smov 8  }
   0xb   :  { %31 = dma.hbm_to_vmem [thread:$0]  %s24_s18, 768, %s26_s20, [#allocation5], %s266_s23, %s266_s23, %s267_s24  }
   0xc   :  { %s268_s25 = smov [#allocation7]  }
   0xd   :  { %s39_s26 = sshll.u32 %s268_s25, 4  ;;  %s40_s26 = int_to_ptr.vmem [resolvable:$true] %s39_s26 }
   0xe   :  { %42 = dma.hbm_to_vmem [thread:$0]  %s38_s0, 128, %s40_s26, [#allocation8]  }
   0xf   :  { %258 = dma.done.wait [#allocation5], 768  }
  0x10   :  { %259 = vsyncadd [#allocation5], 4294966528 }
  0x11   :  { %260 = dma.done.wait [#allocation8], 128  }
  0x12   :  { %261 = vsyncadd [#allocation8], 4294967168  ;;  %vm54_vm0 = vcmask 1046528   ;;  %v51_v0 = vld [vmem:[#allocation7] sm:$0x7f]  ;;  %s304_s1 = sld [smem:[#allocation3]] }
  0x13   :  { %v52_v1 = vld [vmem:[#allocation4] sm:$0x7f]  ;;  %v68_v2 = vld [vmem:[#allocation4 + $0x8] sm:$0x7f]  ;;  %v83_v5 = vld [vmem:[#allocation4 + $0x10] sm:$0x7f] }
  0x14   :  { %v53_v3 = vmul.f32 %v52_v1, %v51_v0  ;;  %v69_v4 = vmul.f32 %v68_v2, %v51_v0  ;;  %v98_v6 = vld [vmem:[#allocation4 + $0x18] sm:$0x7f]  ;;  %v113_v7 = vld [vmem:[#allocation4 + $0x20] sm:$0x7f]  ;;  %v84_v8 = vmul.f32 %v83_v5, %v51_v0  ;;  %v128_v11 = vld [vmem:[#allocation4 + $0x28] sm:$0x7f] }
  0x15   :  { %v99_v9 = vmul.f32 %v98_v6, %v51_v0  ;;  %v114_v10 = vmul.f32 %v113_v7, %v51_v0  ;;  %v129_v14 = vmul.f32 %v128_v11, %v51_v0  ;;  %s307_s2 = sld [smem:[#allocation3 + $0x1]]  ;;  %s269_s4 = smov [#allocation9]  }
  0x16   :  { %v55_v12 = vsel %vm54_vm0, %v53_v3, 0.0  ;;  %v70_v13 = vsel %vm54_vm0, %v69_v4, 0.0  ;;  %v85_v17 = vsel %vm54_vm0, %v84_v8, 0.0  ;;  %s309_s27 = sld [smem:[#allocation3 + $0x2]]  ;;  %s148_s5 = sshll.u32 %s269_s4, 4  ;;  %s149_s5 = int_to_ptr.vmem [resolvable:$true] %s148_s5 }
  0x17   :  { %v56_v15 = vrot.slane %v55_v12, 4  ;;  %v71_v16 = vrot.slane %v70_v13, 4  ;;  %v100_v18 = vsel %vm54_vm0, %v99_v9, 0.0  ;;  %v86_v19 = vrot.slane %v85_v17, 4  ;;  %s311_s28 = sld [smem:[#allocation3 + $0x3]]  ;;  %s150_s8 = sshll.u32 %s326_s3, 4  ;;  %s151_s8 = int_to_ptr.hbm [resolvable:$true] %s150_s8 }
  0x18   :  { %v101_v20 = vrot.slane %v100_v18, 4  ;;  %v115_v21 = vsel %vm54_vm0, %v114_v10, 0.0  ;;  %v130_v25 = vsel %vm54_vm0, %v129_v14, 0.0  ;;  %s313_s29 = sld [smem:[#allocation3 + $0x4]]  ;;  %v64_v48 = vstv %s304_s1 }
  0x19   :  { %v57_v22 = vadd.f32 %v56_v15, %v55_v12  ;;  %v72_v23 = vadd.f32 %v71_v16, %v70_v13  ;;  %v116_v24 = vrot.slane %v115_v21, 4  ;;  %v87_v26 = vadd.f32 %v86_v19, %v85_v17  ;;  %s165_s30 = sld [smem:[#allocation3 + $0x5]] }
  0x1a   :  { %v102_v27 = vadd.f32 %v101_v20, %v100_v18  ;;  %v131_v28 = vrot.slane %v130_v25, 4 }
  0x1b   :  { %v58_v29 = vrot.slane %v57_v22, 2  ;;  %v73_v30 = vrot.slane %v72_v23, 2  ;;  %v117_v31 = vadd.f32 %v116_v24, %v115_v21  ;;  %v88_v32 = vrot.slane %v87_v26, 2 }
  0x1c   :  { %v103_v33 = vrot.slane %v102_v27, 2  ;;  %v132_v34 = vadd.f32 %v131_v28, %v130_v25  ;;  %v79_v51 = vstv %s307_s2  ;;  %v94_v57 = vstv %s309_s27 }
  0x1d   :  { %v59_v35 = vadd.f32 %v58_v29, %v57_v22  ;;  %v74_v36 = vadd.f32 %v73_v30, %v72_v23  ;;  %v118_v37 = vrot.slane %v117_v31, 2  ;;  %v89_v38 = vadd.f32 %v88_v32, %v87_v26 }
  0x1e   :  { %v104_v39 = vadd.f32 %v103_v33, %v102_v27  ;;  %v133_v40 = vrot.slane %v132_v34, 2  ;;  %v109_v61 = vstv %s311_s28  ;;  %v124_v3 = vstv %s313_s29 }
  0x1f   :  { %v60_v41 = vrot.slane %v59_v35, 1  ;;  %v75_v42 = vrot.slane %v74_v36, 1  ;;  %v119_v43 = vadd.f32 %v118_v37, %v117_v31  ;;  %v90_v44 = vrot.slane %v89_v38, 1 }
  0x20   :  { %v105_v45 = vrot.slane %v104_v39, 1  ;;  %v134_v46 = vadd.f32 %v133_v40, %v132_v34  ;;  %v139_v7 = vstv %s165_s30 }
  0x21   :  { %v61_v47 = vadd.f32 %v60_v41, %v59_v35  ;;  %v76_v49 = vadd.f32 %v75_v42, %v74_v36  ;;  %v120_v50 = vrot.slane %v119_v43, 1  ;;  %v91_v52 = vadd.f32 %v90_v44, %v89_v38 }
  0x22   :  { %v106_v53 = vadd.f32 %v105_v45, %v104_v39  ;;  %v135_v54 = vrot.slane %v134_v46, 1 }
  0x23   :  { %v63_v55 = vmul.f32 %v61_v47, %v61_v47  ;;  %v78_v56 = vmul.f32 %v76_v49, %v76_v49  ;;  %v121_v58 = vadd.f32 %v120_v50, %v119_v43  ;;  %v93_v59 = vmul.f32 %v91_v52, %v91_v52 }
  0x24   :  { %v108_v60 = vmul.f32 %v106_v53, %v106_v53  ;;  %v136_v62 = vadd.f32 %v135_v54, %v134_v46 }
  0x25   :  { %v65_v63 = vmul.f32 %v64_v48, %v63_v55  ;;  %v80_v0 = vmul.f32 %v79_v51, %v78_v56  ;;  %v123_v1 = vmul.f32 %v121_v58, %v121_v58  ;;  %v95_v2 = vmul.f32 %v94_v57, %v93_v59 }
  0x26   :  { %v110_v5 = vmul.f32 %v109_v61, %v108_v60  ;;  %v138_v6 = vmul.f32 %v136_v62, %v136_v62 }
  0x27   :  { %v81_v4 = vadd.f32 %v80_v0, %v65_v63  ;;  %v125_v9 = vmul.f32 %v124_v3, %v123_v1 }
  0x28   :  { %v140_v11 = vmul.f32 %v139_v7, %v138_v6 }
  0x29   :  { %v96_v8 = vadd.f32 %v95_v2, %v81_v4 }
  0x2b   :  { %v111_v10 = vadd.f32 %v110_v5, %v96_v8 }
  0x2d   :  { %v126_v12 = vadd.f32 %v125_v9, %v111_v10 }
  0x2f   :  { %v141_v13 = vadd.f32 %v140_v11, %v126_v12 }
  0x31   :  { %142 = vst [vmem:[#allocation9] sm:$0x1] %v141_v13 }
  0x32   :  { %153 = dma.vmem_to_hbm [thread:$0]  %s149_s5, 16, %s151_s8, [#allocation6]  }
  0x33   :  { %262 = dma.done.wait [#allocation6], 16  }
  0x34   :  { %263 = vsyncadd [#allocation6], 4294967280 }
  0x35   :  { %158 = vsyncpa [#allocation5], 1 }
  0x36   :  { %159 = vsyncpa [#allocation8], 1 }
  0x37   :  { %160 = vsyncpa [#allocation6], 1 }

</bundles_post_ra>
